<compile_context>
chip_gen: v6e
topology: v6e:2x2x1
jax: 0.10.0
libtpu: 0.0.40
codegen_flags: <defaults>
</compile_context>

<pallas_src>
import math

import jax
import jax.numpy as jnp
from jax import lax
from jax.experimental import pallas as pl
from jax.experimental.pallas import tpu as pltpu

# ---- model hyperparameters (small, consistent with the module) ----
D_MODEL = 32          # d_model
NHEAD = 4             # nhead
HEAD_DIM = D_MODEL // NHEAD
DIM_FF = 64           # dim_feedforward
SEQ = 8               # L
BATCH = 2             # N
LN_EPS = 1e-5
NEG_INF = -1e30       # additive mask value (safe in f32: exp underflows to 0)


def _make_kernel(n_batch, n_head, head_dim, dim_ff):
    """Kernel over one flattened (M, E) slab; row r belongs to batch r % n_batch."""

    def kernel(x_ref, pos_ref, w_ref, w2_ref, b_ref, o_ref):
        x = x_ref[...]                                    # (M, E)
        m, e = x.shape

        # ---- packed bias / LayerNorm-parameter slab: static lane slices, one tile ----
        bqk   = b_ref[0:1, 0:2 * e]                       # (1, 2E)  [bq*scale | bk]
        bv    = b_ref[0:1, 2 * e:3 * e]                   # (1, E)
        bo    = b_ref[0:1, 3 * e:4 * e]                   # (1, E)
        ln1_g = b_ref[1:2, 0:e]
        ln1_b = b_ref[1:2, e:2 * e]
        ln2_g = b_ref[1:2, 2 * e:3 * e]
        ln2_b = b_ref[1:2, 3 * e:4 * e]
        b1    = b_ref[2:3, 0:dim_ff]
        b2    = b_ref[2:3, dim_ff:dim_ff + e]

        # ---- fused lane-dense in-projections (2 matmuls, no head-major broadcasts) ----
        qk_in = x + pos_ref[...]                          # with_pos_embed(src, pos)
        qk = jnp.dot(qk_in, w_ref[:, 0:2 * e],
                     preferred_element_type=jnp.float32) + bqk     # (M, 2E) [q*s | k]
        v = jnp.dot(x, w_ref[:, 2 * e:3 * e],
                    preferred_element_type=jnp.float32) + bv       # (M, E)
        q = qk[:, 0:e]
        k = qk[:, e:2 * e]

        # ---- per-head scores, stacked along sublanes -> ONE masked softmax ----
        dn = (((1,), (1,)), ((), ()))                     # contract last dims, no batch
        s = jnp.concatenate(
            [lax.dot_general(q[:, h * head_dim:(h + 1) * head_dim],
                             k[:, h * head_dim:(h + 1) * head_dim],
                             dn, preferred_element_type=jnp.float32)
             for h in range(n_head)],
            axis=0)                                       # (H*M, M)

        # cross-batch mask generated in-kernel (row r%M -> batch (r%M)%N == r%N).
        qi = lax.broadcasted_iota(jnp.int32, s.shape, 0) % n_batch
        ki = lax.broadcasted_iota(jnp.int32, s.shape, 1) % n_batch
        s = s + jnp.where(qi == ki, 0.0, NEG_INF)

        s = s - jnp.max(s, axis=-1, keepdims=True)
        p = jnp.exp(s)
        p = p * pl.reciprocal(jnp.sum(p, axis=-1, keepdims=True), approx=False)

        # ---- weighted values; heads folded onto lanes; single out-projection ----
        ctx = jnp.concatenate(
            [jnp.dot(p[h * m:(h + 1) * m, :],
                     v[:, h * head_dim:(h + 1) * head_dim],
                     preferred_element_type=jnp.float32)
             for h in range(n_head)],
            axis=1)                                       # (M, E), head h on lanes h*Dh
        attn = jnp.dot(ctx, w_ref[:, 3 * e:4 * e],
                       preferred_element_type=jnp.float32) + bo

        # ---- residual + LayerNorm1 (dropout1 == identity, eval mode) ----
        y = x + attn
        mu = jnp.mean(y, axis=-1, keepdims=True)
        var = jnp.mean((y - mu) ** 2, axis=-1, keepdims=True)
        y = (y - mu) * lax.rsqrt(var + LN_EPS) * ln1_g + ln1_b

        # ---- feed-forward: linear1 -> relu -> linear2 (dropout == identity) ----
        h1 = jnp.dot(y, w_ref[:, 4 * e:4 * e + dim_ff],
                     preferred_element_type=jnp.float32) + b1
        h1 = jnp.maximum(h1, 0.0)
        h2 = jnp.dot(h1, w2_ref[...], preferred_element_type=jnp.float32) + b2

        # ---- residual + LayerNorm2 (dropout2 == identity) ----
        z = y + h2
        mu = jnp.mean(z, axis=-1, keepdims=True)
        var = jnp.mean((z - mu) ** 2, axis=-1, keepdims=True)
        z = (z - mu) * lax.rsqrt(var + LN_EPS) * ln2_g + ln2_b

        o_ref[...] = z

    return kernel


@jax.jit
def self_attn_layer(src, pos, prep):
    """src, pos: (L, N, E) float32 (PyTorch MultiheadAttention convention)."""
    L, N, E = src.shape
    M = L * N
    # Free row-major flatten (no transposes); add a leading slab axis.  With multiple
    # independent slabs / layers, stack them along this axis to amortize the launch
    # (weights stay VMEM-resident; the axis is "parallel" for v7x's 2 TensorCores).
    x = src.reshape(1, M, E)
    p = pos.reshape(1, M, E)
    S = x.shape[0]

    w_slab = prep['w_slab']        # (E, 4E + F) = (32, 192)
    w2     = prep['w2']            # (F, E)      = (64, 32)
    b_slab = prep['b_slab']        # (8, 128)

    kernel = _make_kernel(N, NHEAD, HEAD_DIM, DIM_FF)

    out = pl.pallas_call(
        kernel,
        out_shape=jax.ShapeDtypeStruct((S, M, E), jnp.float32),
        grid=(S,),
        in_specs=[
            pl.BlockSpec((None, M, E), lambda s: (s, 0, 0)),     # activations: pipelined
            pl.BlockSpec((None, M, E), lambda s: (s, 0, 0)),
            pl.BlockSpec(w_slab.shape, lambda s: (0, 0)),        # weights: resident
            pl.BlockSpec(w2.shape, lambda s: (0, 0)),
            pl.BlockSpec(b_slab.shape, lambda s: (0, 0)),
        ],
        out_specs=pl.BlockSpec((None, M, E), lambda s: (s, 0, 0)),
        compiler_params=pltpu.CompilerParams(
            dimension_semantics=("parallel",)),
    )(x, p, w_slab, w2, b_slab)

    return out.reshape(L, N, E)    # free reshape back to (L, N, E)


def prepare_params(params):
    """One-time prep: weight fusion + operand packing into 3 slabs."""
    E, F, Dh = D_MODEL, DIM_FF, HEAD_DIM
    scale = 1.0 / math.sqrt(Dh)

    # weight slab columns: [ Wq*scale | Wk | Wv | Wo | W1 ]  ->  (E, 4E + F)
    w_slab = jnp.concatenate(
        [params['wq'] * scale, params['wk'], params['wv'], params['wo'], params['w1']],
        axis=1).astype(jnp.float32)

    # one (8, 128) row slab holding every bias / LayerNorm parameter
    b_slab = jnp.zeros((8, 128), jnp.float32)
    b_slab = b_slab.at[0, 0:E].set(params['bq'][0] * scale)
    b_slab = b_slab.at[0, E:2 * E].set(params['bk'][0])
    b_slab = b_slab.at[0, 2 * E:3 * E].set(params['bv'][0])
    b_slab = b_slab.at[0, 3 * E:4 * E].set(params['bo'][0])
    b_slab = b_slab.at[1, 0:E].set(params['ln1_g'][0])
    b_slab = b_slab.at[1, E:2 * E].set(params['ln1_b'][0])
    b_slab = b_slab.at[1, 2 * E:3 * E].set(params['ln2_g'][0])
    b_slab = b_slab.at[1, 3 * E:4 * E].set(params['ln2_b'][0])
    b_slab = b_slab.at[2, 0:F].set(params['b1'][0])
    b_slab = b_slab.at[2, F:F + E].set(params['b2'][0])

    return {'w_slab': w_slab,
            'w2': params['w2'].astype(jnp.float32),
            'b_slab': b_slab}


def _reference(src, pos, params):
    """Pure-JAX reference mirroring PyTorch SelfAttnLayer.forward (eval mode)."""
    x = jnp.transpose(src, (1, 0, 2))   # (N, L, E)
    p = jnp.transpose(pos, (1, 0, 2))
    qk_in = x + p
    q = qk_in @ params['wq'] + params['bq']
    k = qk_in @ params['wk'] + params['bk']
    v = x @ params['wv'] + params['bv']
    N, L, E = x.shape
    qh = q.reshape(N, L, NHEAD, HEAD_DIM).transpose(0, 2, 1, 3)
    kh = k.reshape(N, L, NHEAD, HEAD_DIM).transpose(0, 2, 1, 3)
    vh = v.reshape(N, L, NHEAD, HEAD_DIM).transpose(0, 2, 1, 3)
    s = jnp.einsum('nhld,nhmd->nhlm', qh, kh) / math.sqrt(HEAD_DIM)
    pattn = jax.nn.softmax(s, axis=-1)
    o = jnp.einsum('nhlm,nhmd->nhld', pattn, vh).transpose(0, 2, 1, 3).reshape(N, L, E)
    o = o @ params['wo'] + params['bo']
    y = x + o
    mu = y.mean(-1, keepdims=True)
    var = ((y - mu) ** 2).mean(-1, keepdims=True)
    y = (y - mu) / jnp.sqrt(var + LN_EPS) * params['ln1_g'] + params['ln1_b']
    h = jnp.maximum(y @ params['w1'] + params['b1'], 0.0)
    h = h @ params['w2'] + params['b2']
    z = y + h
    mu = z.mean(-1, keepdims=True)
    var = ((z - mu) ** 2).mean(-1, keepdims=True)
    z = (z - mu) / jnp.sqrt(var + LN_EPS) * params['ln2_g'] + params['ln2_b']
    return z.transpose(1, 0, 2)


def make_params(key):
    ks = jax.random.split(key, 12)
    E, F = D_MODEL, DIM_FF
    def nrm(k, shape, scale=0.02):
        return (scale * jax.random.normal(k, shape)).astype(jnp.float32)
    return {
        # attention in-projection, stored (in, out); biases as (1, out)
        'wq': nrm(ks[0], (E, E)), 'wk': nrm(ks[1], (E, E)), 'wv': nrm(ks[2], (E, E)),
        'bq': nrm(ks[3], (1, E)), 'bk': nrm(ks[4], (1, E)), 'bv': nrm(ks[5], (1, E)),
        # attention out-projection
        'wo': nrm(ks[6], (E, E)), 'bo': nrm(ks[7], (1, E)),
        # layernorm1 / layernorm2 (affine)
        'ln1_g': jnp.ones((1, E), jnp.float32), 'ln1_b': jnp.zeros((1, E), jnp.float32),
        'ln2_g': jnp.ones((1, E), jnp.float32), 'ln2_b': jnp.zeros((1, E), jnp.float32),
        # feed-forward
        'w1': nrm(ks[8], (E, F)), 'b1': nrm(ks[9], (1, F)),
        'w2': nrm(ks[10], (F, E)), 'b2': nrm(ks[11], (1, E)),
    }


if __name__ == "__main__":
    key = jax.random.PRNGKey(0)
    k_src, k_pos, k_par = jax.random.split(key, 3)

    src = jax.random.normal(k_src, (SEQ, BATCH, D_MODEL), dtype=jnp.float32)
    pos = jax.random.normal(k_pos, (SEQ, BATCH, D_MODEL), dtype=jnp.float32)
    params = make_params(k_par)
    prep = prepare_params(params)          # one-time weight fusion / operand packing

    out = self_attn_layer(src, pos, prep)
    out = jax.block_until_ready(out)

    ref = _reference(src, pos, params)
    assert out.shape == (SEQ, BATCH, D_MODEL)
    assert jnp.allclose(out, ref, atol=1e-3, rtol=1e-3), \
        f"max abs err {jnp.max(jnp.abs(out - ref))}"

    print("KERNEL_OK")
</pallas_src>

<mosaic_0001>
module attributes {stable_mosaic.version = 11 : i64} {
  func.func @kernel(%arg0: i32, %arg1: memref<1x16x32xf32, #tpu.memory_space<vmem>>, %arg2: memref<1x16x32xf32, #tpu.memory_space<vmem>>, %arg3: memref<32x192xf32, #tpu.memory_space<vmem>>, %arg4: memref<64x32xf32, #tpu.memory_space<vmem>>, %arg5: memref<8x128xf32, #tpu.memory_space<vmem>>, %arg6: memref<1x16x32xf32, #tpu.memory_space<vmem>>) attributes {dimension_semantics = [#tpu.dimension_semantics<parallel>], iteration_bounds = array<i64: 1>, scalar_prefetch = 0 : i64, scratch_operands = 0 : i64, tpu.core_type = #tpu.core_type<tc>, window_params = [{transform_indices = @transform_0, window_bounds = array<i64: 1, 16, 32>}, {transform_indices = @transform_1, window_bounds = array<i64: 1, 16, 32>}, {pipeline_mode = #tpu.pipeline_mode<synchronous>, transform_indices = @transform_2, window_bounds = array<i64: 32, 192>}, {pipeline_mode = #tpu.pipeline_mode<synchronous>, transform_indices = @transform_3, window_bounds = array<i64: 64, 32>}, {pipeline_mode = #tpu.pipeline_mode<synchronous>, transform_indices = @transform_4, window_bounds = array<i64: 8, 128>}, {transform_indices = @transform_5, window_bounds = array<i64: 1, 16, 32>}]} {
    %c0 = arith.constant 0 : index
    %c0_0 = arith.constant 0 : index
    %c0_1 = arith.constant 0 : index
    %0 = vector.load %arg1[%c0, %c0_0, %c0_1] : memref<1x16x32xf32, #tpu.memory_space<vmem>>, vector<1x16x32xf32>
    %1 = vector.shape_cast %0 : vector<1x16x32xf32> to vector<16x32xf32>
    %c0_2 = arith.constant 0 : index
    %c0_3 = arith.constant 0 : index
    %2 = vector.load %arg5[%c0_2, %c0_3] : memref<8x128xf32, #tpu.memory_space<vmem>>, vector<1x64xf32>
    %c0_4 = arith.constant 0 : index
    %c64 = arith.constant 64 : index
    %3 = vector.load %arg5[%c0_4, %c64] : memref<8x128xf32, #tpu.memory_space<vmem>>, vector<1x32xf32>
    %c0_5 = arith.constant 0 : index
    %c96 = arith.constant 96 : index
    %4 = vector.load %arg5[%c0_5, %c96] : memref<8x128xf32, #tpu.memory_space<vmem>>, vector<1x32xf32>
    %c1 = arith.constant 1 : index
    %c0_6 = arith.constant 0 : index
    %5 = vector.load %arg5[%c1, %c0_6] : memref<8x128xf32, #tpu.memory_space<vmem>>, vector<1x32xf32>
    %c1_7 = arith.constant 1 : index
    %c32 = arith.constant 32 : index
    %6 = vector.load %arg5[%c1_7, %c32] : memref<8x128xf32, #tpu.memory_space<vmem>>, vector<1x32xf32>
    %c1_8 = arith.constant 1 : index
    %c64_9 = arith.constant 64 : index
    %7 = vector.load %arg5[%c1_8, %c64_9] : memref<8x128xf32, #tpu.memory_space<vmem>>, vector<1x32xf32>
    %c1_10 = arith.constant 1 : index
    %c96_11 = arith.constant 96 : index
    %8 = vector.load %arg5[%c1_10, %c96_11] : memref<8x128xf32, #tpu.memory_space<vmem>>, vector<1x32xf32>
    %c2 = arith.constant 2 : index
    %c0_12 = arith.constant 0 : index
    %9 = vector.load %arg5[%c2, %c0_12] : memref<8x128xf32, #tpu.memory_space<vmem>>, vector<1x64xf32>
    %c2_13 = arith.constant 2 : index
    %c64_14 = arith.constant 64 : index
    %10 = vector.load %arg5[%c2_13, %c64_14] : memref<8x128xf32, #tpu.memory_space<vmem>>, vector<1x32xf32>
    %c0_15 = arith.constant 0 : index
    %c0_16 = arith.constant 0 : index
    %c0_17 = arith.constant 0 : index
    %11 = vector.load %arg2[%c0_15, %c0_16, %c0_17] : memref<1x16x32xf32, #tpu.memory_space<vmem>>, vector<1x16x32xf32>
    %12 = vector.shape_cast %11 : vector<1x16x32xf32> to vector<16x32xf32>
    %13 = arith.addf %1, %12 : vector<16x32xf32>
    %c0_18 = arith.constant 0 : index
    %c0_19 = arith.constant 0 : index
    %14 = vector.load %arg3[%c0_18, %c0_19] : memref<32x192xf32, #tpu.memory_space<vmem>>, vector<32x64xf32>
    %cst = arith.constant dense<0.000000e+00> : vector<16x64xf32>
    %15 = tpu.matmul %13, %14, %cst {dimension_numbers = #tpu.dot_dimension_numbers<[1], [0], [0], [1], [0, 0, 1, 1], [], []>} : vector<16x32xf32>, vector<32x64xf32>, vector<16x64xf32> -> vector<16x64xf32>
    %16 = vector.broadcast %2 : vector<1x64xf32> to vector<16x64xf32>
    %17 = arith.addf %15, %16 : vector<16x64xf32>
    %c0_20 = arith.constant 0 : index
    %c64_21 = arith.constant 64 : index
    %18 = vector.load %arg3[%c0_20, %c64_21] : memref<32x192xf32, #tpu.memory_space<vmem>>, vector<32x32xf32>
    %cst_22 = arith.constant dense<0.000000e+00> : vector<16x32xf32>
    %19 = tpu.matmul %1, %18, %cst_22 {dimension_numbers = #tpu.dot_dimension_numbers<[1], [0], [0], [1], [0, 0, 1, 1], [], []>} : vector<16x32xf32>, vector<32x32xf32>, vector<16x32xf32> -> vector<16x32xf32>
    %20 = vector.broadcast %3 : vector<1x32xf32> to vector<16x32xf32>
    %21 = arith.addf %19, %20 : vector<16x32xf32>
    %22 = vector.extract_strided_slice %17 {offsets = [0, 0], sizes = [16, 32], strides = [1, 1]} : vector<16x64xf32> to vector<16x32xf32>
    %23 = vector.extract_strided_slice %17 {offsets = [0, 32], sizes = [16, 32], strides = [1, 1]} : vector<16x64xf32> to vector<16x32xf32>
    %24 = vector.extract_strided_slice %22 {offsets = [0, 0], sizes = [16, 8], strides = [1, 1]} : vector<16x32xf32> to vector<16x8xf32>
    %25 = vector.extract_strided_slice %23 {offsets = [0, 0], sizes = [16, 8], strides = [1, 1]} : vector<16x32xf32> to vector<16x8xf32>
    %cst_23 = arith.constant dense<0.000000e+00> : vector<16x16xf32>
    %26 = tpu.matmul %24, %25, %cst_23 {dimension_numbers = #tpu.dot_dimension_numbers<[1], [1], [0], [0], [0, 0, 1, 0], [], []>} : vector<16x8xf32>, vector<16x8xf32>, vector<16x16xf32> -> vector<16x16xf32>
    %27 = vector.extract_strided_slice %22 {offsets = [0, 8], sizes = [16, 8], strides = [1, 1]} : vector<16x32xf32> to vector<16x8xf32>
    %28 = vector.extract_strided_slice %23 {offsets = [0, 8], sizes = [16, 8], strides = [1, 1]} : vector<16x32xf32> to vector<16x8xf32>
    %cst_24 = arith.constant dense<0.000000e+00> : vector<16x16xf32>
    %29 = tpu.matmul %27, %28, %cst_24 {dimension_numbers = #tpu.dot_dimension_numbers<[1], [1], [0], [0], [0, 0, 1, 0], [], []>} : vector<16x8xf32>, vector<16x8xf32>, vector<16x16xf32> -> vector<16x16xf32>
    %30 = vector.extract_strided_slice %22 {offsets = [0, 16], sizes = [16, 8], strides = [1, 1]} : vector<16x32xf32> to vector<16x8xf32>
    %31 = vector.extract_strided_slice %23 {offsets = [0, 16], sizes = [16, 8], strides = [1, 1]} : vector<16x32xf32> to vector<16x8xf32>
    %cst_25 = arith.constant dense<0.000000e+00> : vector<16x16xf32>
    %32 = tpu.matmul %30, %31, %cst_25 {dimension_numbers = #tpu.dot_dimension_numbers<[1], [1], [0], [0], [0, 0, 1, 0], [], []>} : vector<16x8xf32>, vector<16x8xf32>, vector<16x16xf32> -> vector<16x16xf32>
    %33 = vector.extract_strided_slice %22 {offsets = [0, 24], sizes = [16, 8], strides = [1, 1]} : vector<16x32xf32> to vector<16x8xf32>
    %34 = vector.extract_strided_slice %23 {offsets = [0, 24], sizes = [16, 8], strides = [1, 1]} : vector<16x32xf32> to vector<16x8xf32>
    %cst_26 = arith.constant dense<0.000000e+00> : vector<16x16xf32>
    %35 = tpu.matmul %33, %34, %cst_26 {dimension_numbers = #tpu.dot_dimension_numbers<[1], [1], [0], [0], [0, 0, 1, 0], [], []>} : vector<16x8xf32>, vector<16x8xf32>, vector<16x16xf32> -> vector<16x16xf32>
    %36 = tpu.concatenate %26, %29, %32, %35 in 0 : vector<16x16xf32>, vector<16x16xf32>, vector<16x16xf32>, vector<16x16xf32> -> vector<64x16xf32>
    %37 = tpu.iota {dimensions = array<i32: 0>} : vector<64x16xi32>
    %c2_i32 = arith.constant 2 : i32
    %c0_i32 = arith.constant 0 : i32
    %38 = arith.cmpi eq, %c2_i32, %c0_i32 : i32
    %c1_i32 = arith.constant 1 : i32
    %39 = arith.select %38, %c1_i32, %c2_i32 : i32
    %40 = vector.broadcast %39 : i32 to vector<64x16xi32>
    %41 = arith.remsi %37, %40 : vector<64x16xi32>
    %c0_i32_27 = arith.constant 0 : i32
    %42 = vector.broadcast %c0_i32_27 : i32 to vector<64x16xi32>
    %43 = arith.cmpi ne, %41, %42 : vector<64x16xi32>
    %c0_i32_28 = arith.constant 0 : i32
    %44 = vector.broadcast %c0_i32_28 : i32 to vector<64x16xi32>
    %45 = arith.cmpi slt, %41, %44 : vector<64x16xi32>
    %c0_i32_29 = arith.constant 0 : i32
    %46 = arith.cmpi slt, %39, %c0_i32_29 : i32
    %47 = vector.broadcast %46 : i1 to vector<64x16xi1>
    %48 = vector.broadcast %47 : vector<64x16xi1> to vector<64x16xi1>
    %49 = arith.xori %45, %48 : vector<64x16xi1>
    %50 = arith.andi %49, %43 : vector<64x16xi1>
    %51 = vector.broadcast %39 : i32 to vector<64x16xi32>
    %52 = arith.addi %41, %51 : vector<64x16xi32>
    %53 = arith.select %50, %52, %41 : vector<64x16xi1>, vector<64x16xi32>
    %54 = tpu.iota {dimensions = array<i32: 1>} : vector<64x16xi32>
    %c2_i32_30 = arith.constant 2 : i32
    %c0_i32_31 = arith.constant 0 : i32
    %55 = arith.cmpi eq, %c2_i32_30, %c0_i32_31 : i32
    %c1_i32_32 = arith.constant 1 : i32
    %56 = arith.select %55, %c1_i32_32, %c2_i32_30 : i32
    %57 = vector.broadcast %56 : i32 to vector<64x16xi32>
    %58 = arith.remsi %54, %57 : vector<64x16xi32>
    %c0_i32_33 = arith.constant 0 : i32
    %59 = vector.broadcast %c0_i32_33 : i32 to vector<64x16xi32>
    %60 = arith.cmpi ne, %58, %59 : vector<64x16xi32>
    %c0_i32_34 = arith.constant 0 : i32
    %61 = vector.broadcast %c0_i32_34 : i32 to vector<64x16xi32>
    %62 = arith.cmpi slt, %58, %61 : vector<64x16xi32>
    %c0_i32_35 = arith.constant 0 : i32
    %63 = arith.cmpi slt, %56, %c0_i32_35 : i32
    %64 = vector.broadcast %63 : i1 to vector<64x16xi1>
    %65 = vector.broadcast %64 : vector<64x16xi1> to vector<64x16xi1>
    %66 = arith.xori %62, %65 : vector<64x16xi1>
    %67 = arith.andi %66, %60 : vector<64x16xi1>
    %68 = vector.broadcast %56 : i32 to vector<64x16xi32>
    %69 = arith.addi %58, %68 : vector<64x16xi32>
    %70 = arith.select %67, %69, %58 : vector<64x16xi1>, vector<64x16xi32>
    %71 = arith.cmpi eq, %53, %70 : vector<64x16xi32>
    %cst_36 = arith.constant 0.000000e+00 : f32
    %cst_37 = arith.constant -1.000000e+30 : f32
    %72 = vector.broadcast %cst_36 : f32 to vector<64x16xf32>
    %73 = vector.broadcast %cst_37 : f32 to vector<64x16xf32>
    %74 = arith.select %71, %72, %73 : vector<64x16xi1>, vector<64x16xf32>
    %75 = arith.addf %36, %74 : vector<64x16xf32>
    %cst_38 = arith.constant dense<0xFF800000> : vector<64xf32>
    %76 = vector.multi_reduction <maximumf>, %75, %cst_38 [1] : vector<64x16xf32> to vector<64xf32>
    %77 = vector.shape_cast %76 : vector<64xf32> to vector<64x1xf32>
    %78 = vector.broadcast %77 : vector<64x1xf32> to vector<64x16xf32>
    %79 = arith.subf %75, %78 : vector<64x16xf32>
    %80 = math.exp %79 : vector<64x16xf32>
    %cst_39 = arith.constant dense<0.000000e+00> : vector<64xf32>
    %81 = vector.multi_reduction <add>, %80, %cst_39 [1] : vector<64x16xf32> to vector<64xf32>
    %82 = vector.shape_cast %81 : vector<64xf32> to vector<64x1xf32>
    %83 = tpu.reciprocal %82 : vector<64x1xf32> -> vector<64x1xf32>
    %84 = vector.broadcast %83 : vector<64x1xf32> to vector<64x16xf32>
    %85 = arith.mulf %80, %84 : vector<64x16xf32>
    %86 = vector.extract_strided_slice %85 {offsets = [0, 0], sizes = [16, 16], strides = [1, 1]} : vector<64x16xf32> to vector<16x16xf32>
    %87 = vector.extract_strided_slice %21 {offsets = [0, 0], sizes = [16, 8], strides = [1, 1]} : vector<16x32xf32> to vector<16x8xf32>
    %cst_40 = arith.constant dense<0.000000e+00> : vector<16x8xf32>
    %88 = tpu.matmul %86, %87, %cst_40 {dimension_numbers = #tpu.dot_dimension_numbers<[1], [0], [0], [1], [0, 0, 1, 1], [], []>} : vector<16x16xf32>, vector<16x8xf32>, vector<16x8xf32> -> vector<16x8xf32>
    %89 = vector.extract_strided_slice %85 {offsets = [16, 0], sizes = [16, 16], strides = [1, 1]} : vector<64x16xf32> to vector<16x16xf32>
    %90 = vector.extract_strided_slice %21 {offsets = [0, 8], sizes = [16, 8], strides = [1, 1]} : vector<16x32xf32> to vector<16x8xf32>
    %cst_41 = arith.constant dense<0.000000e+00> : vector<16x8xf32>
    %91 = tpu.matmul %89, %90, %cst_41 {dimension_numbers = #tpu.dot_dimension_numbers<[1], [0], [0], [1], [0, 0, 1, 1], [], []>} : vector<16x16xf32>, vector<16x8xf32>, vector<16x8xf32> -> vector<16x8xf32>
    %92 = vector.extract_strided_slice %85 {offsets = [32, 0], sizes = [16, 16], strides = [1, 1]} : vector<64x16xf32> to vector<16x16xf32>
    %93 = vector.extract_strided_slice %21 {offsets = [0, 16], sizes = [16, 8], strides = [1, 1]} : vector<16x32xf32> to vector<16x8xf32>
    %cst_42 = arith.constant dense<0.000000e+00> : vector<16x8xf32>
    %94 = tpu.matmul %92, %93, %cst_42 {dimension_numbers = #tpu.dot_dimension_numbers<[1], [0], [0], [1], [0, 0, 1, 1], [], []>} : vector<16x16xf32>, vector<16x8xf32>, vector<16x8xf32> -> vector<16x8xf32>
    %95 = vector.extract_strided_slice %85 {offsets = [48, 0], sizes = [16, 16], strides = [1, 1]} : vector<64x16xf32> to vector<16x16xf32>
    %96 = vector.extract_strided_slice %21 {offsets = [0, 24], sizes = [16, 8], strides = [1, 1]} : vector<16x32xf32> to vector<16x8xf32>
    %cst_43 = arith.constant dense<0.000000e+00> : vector<16x8xf32>
    %97 = tpu.matmul %95, %96, %cst_43 {dimension_numbers = #tpu.dot_dimension_numbers<[1], [0], [0], [1], [0, 0, 1, 1], [], []>} : vector<16x16xf32>, vector<16x8xf32>, vector<16x8xf32> -> vector<16x8xf32>
    %98 = tpu.concatenate %88, %91, %94, %97 in 1 : vector<16x8xf32>, vector<16x8xf32>, vector<16x8xf32>, vector<16x8xf32> -> vector<16x32xf32>
    %c0_44 = arith.constant 0 : index
    %c96_45 = arith.constant 96 : index
    %99 = vector.load %arg3[%c0_44, %c96_45] : memref<32x192xf32, #tpu.memory_space<vmem>>, vector<32x32xf32>
    %cst_46 = arith.constant dense<0.000000e+00> : vector<16x32xf32>
    %100 = tpu.matmul %98, %99, %cst_46 {dimension_numbers = #tpu.dot_dimension_numbers<[1], [0], [0], [1], [0, 0, 1, 1], [], []>} : vector<16x32xf32>, vector<32x32xf32>, vector<16x32xf32> -> vector<16x32xf32>
    %101 = vector.broadcast %4 : vector<1x32xf32> to vector<16x32xf32>
    %102 = arith.addf %100, %101 : vector<16x32xf32>
    %103 = arith.addf %1, %102 : vector<16x32xf32>
    %cst_47 = arith.constant dense<0.000000e+00> : vector<16xf32>
    %104 = vector.multi_reduction <add>, %103, %cst_47 [1] : vector<16x32xf32> to vector<16xf32>
    %105 = vector.shape_cast %104 : vector<16xf32> to vector<16x1xf32>
    %cst_48 = arith.constant 3.200000e+01 : f32
    %106 = vector.broadcast %cst_48 : f32 to vector<16x1xf32>
    %107 = arith.divf %105, %106 : vector<16x1xf32>
    %108 = vector.broadcast %107 : vector<16x1xf32> to vector<16x32xf32>
    %109 = arith.subf %103, %108 : vector<16x32xf32>
    %110 = arith.mulf %109, %109 : vector<16x32xf32>
    %cst_49 = arith.constant dense<0.000000e+00> : vector<16xf32>
    %111 = vector.multi_reduction <add>, %110, %cst_49 [1] : vector<16x32xf32> to vector<16xf32>
    %112 = vector.shape_cast %111 : vector<16xf32> to vector<16x1xf32>
    %cst_50 = arith.constant 3.200000e+01 : f32
    %113 = vector.broadcast %cst_50 : f32 to vector<16x1xf32>
    %114 = arith.divf %112, %113 : vector<16x1xf32>
    %115 = vector.broadcast %107 : vector<16x1xf32> to vector<16x32xf32>
    %116 = arith.subf %103, %115 : vector<16x32xf32>
    %cst_51 = arith.constant 9.99999974E-6 : f32
    %117 = vector.broadcast %cst_51 : f32 to vector<16x1xf32>
    %118 = arith.addf %114, %117 : vector<16x1xf32>
    %119 = math.rsqrt %118 : vector<16x1xf32>
    %120 = vector.broadcast %119 : vector<16x1xf32> to vector<16x32xf32>
    %121 = arith.mulf %116, %120 : vector<16x32xf32>
    %122 = vector.broadcast %5 : vector<1x32xf32> to vector<16x32xf32>
    %123 = arith.mulf %121, %122 : vector<16x32xf32>
    %124 = vector.broadcast %6 : vector<1x32xf32> to vector<16x32xf32>
    %125 = arith.addf %123, %124 : vector<16x32xf32>
    %c0_52 = arith.constant 0 : index
    %c128 = arith.constant 128 : index
    %126 = vector.load %arg3[%c0_52, %c128] : memref<32x192xf32, #tpu.memory_space<vmem>>, vector<32x64xf32>
    %cst_53 = arith.constant dense<0.000000e+00> : vector<16x64xf32>
    %127 = tpu.matmul %125, %126, %cst_53 {dimension_numbers = #tpu.dot_dimension_numbers<[1], [0], [0], [1], [0, 0, 1, 1], [], []>} : vector<16x32xf32>, vector<32x64xf32>, vector<16x64xf32> -> vector<16x64xf32>
    %128 = vector.broadcast %9 : vector<1x64xf32> to vector<16x64xf32>
    %129 = arith.addf %127, %128 : vector<16x64xf32>
    %cst_54 = arith.constant 0.000000e+00 : f32
    %130 = vector.broadcast %cst_54 : f32 to vector<16x64xf32>
    %131 = arith.maximumf %129, %130 : vector<16x64xf32>
    %c0_55 = arith.constant 0 : index
    %c0_56 = arith.constant 0 : index
    %132 = vector.load %arg4[%c0_55, %c0_56] : memref<64x32xf32, #tpu.memory_space<vmem>>, vector<64x32xf32>
    %cst_57 = arith.constant dense<0.000000e+00> : vector<16x32xf32>
    %133 = tpu.matmul %131, %132, %cst_57 {dimension_numbers = #tpu.dot_dimension_numbers<[1], [0], [0], [1], [0, 0, 1, 1], [], []>} : vector<16x64xf32>, vector<64x32xf32>, vector<16x32xf32> -> vector<16x32xf32>
    %134 = vector.broadcast %10 : vector<1x32xf32> to vector<16x32xf32>
    %135 = arith.addf %133, %134 : vector<16x32xf32>
    %136 = arith.addf %125, %135 : vector<16x32xf32>
    %cst_58 = arith.constant dense<0.000000e+00> : vector<16xf32>
    %137 = vector.multi_reduction <add>, %136, %cst_58 [1] : vector<16x32xf32> to vector<16xf32>
    %138 = vector.shape_cast %137 : vector<16xf32> to vector<16x1xf32>
    %cst_59 = arith.constant 3.200000e+01 : f32
    %139 = vector.broadcast %cst_59 : f32 to vector<16x1xf32>
    %140 = arith.divf %138, %139 : vector<16x1xf32>
    %141 = vector.broadcast %140 : vector<16x1xf32> to vector<16x32xf32>
    %142 = arith.subf %136, %141 : vector<16x32xf32>
    %143 = arith.mulf %142, %142 : vector<16x32xf32>
    %cst_60 = arith.constant dense<0.000000e+00> : vector<16xf32>
    %144 = vector.multi_reduction <add>, %143, %cst_60 [1] : vector<16x32xf32> to vector<16xf32>
    %145 = vector.shape_cast %144 : vector<16xf32> to vector<16x1xf32>
    %cst_61 = arith.constant 3.200000e+01 : f32
    %146 = vector.broadcast %cst_61 : f32 to vector<16x1xf32>
    %147 = arith.divf %145, %146 : vector<16x1xf32>
    %148 = vector.broadcast %140 : vector<16x1xf32> to vector<16x32xf32>
    %149 = arith.subf %136, %148 : vector<16x32xf32>
    %cst_62 = arith.constant 9.99999974E-6 : f32
    %150 = vector.broadcast %cst_62 : f32 to vector<16x1xf32>
    %151 = arith.addf %147, %150 : vector<16x1xf32>
    %152 = math.rsqrt %151 : vector<16x1xf32>
    %153 = vector.broadcast %152 : vector<16x1xf32> to vector<16x32xf32>
    %154 = arith.mulf %149, %153 : vector<16x32xf32>
    %155 = vector.broadcast %7 : vector<1x32xf32> to vector<16x32xf32>
    %156 = arith.mulf %154, %155 : vector<16x32xf32>
    %157 = vector.broadcast %8 : vector<1x32xf32> to vector<16x32xf32>
    %158 = arith.addf %156, %157 : vector<16x32xf32>
    %c0_63 = arith.constant 0 : index
    %c0_64 = arith.constant 0 : index
    %c0_65 = arith.constant 0 : index
    %159 = vector.load %arg6[%c0_63, %c0_64, %c0_65] : memref<1x16x32xf32, #tpu.memory_space<vmem>>, vector<1x16x32xf32>
    %160 = vector.shape_cast %159 : vector<1x16x32xf32> to vector<16x32xf32>
    %161 = vector.shape_cast %158 : vector<16x32xf32> to vector<1x16x32xf32>
    tpu.vector_store %arg6[%c0_63, %c0_64, %c0_65], %161 {strides = array<i32>} : memref<1x16x32xf32, #tpu.memory_space<vmem>>, vector<1x16x32xf32>,
    return
  }
  func.func @transform_0(%arg0: i32) -> (i32, i32, i32) {
    %c0_i32 = arith.constant 0 : i32
    %c0_i32_0 = arith.constant 0 : i32
    %c0_i32_1 = arith.constant 0 : i32
    return %arg0, %c0_i32, %c0_i32_0 : i32, i32, i32
  }
  func.func @transform_1(%arg0: i32) -> (i32, i32, i32) {
    %c0_i32 = arith.constant 0 : i32
    %c0_i32_0 = arith.constant 0 : i32
    %c0_i32_1 = arith.constant 0 : i32
    return %arg0, %c0_i32, %c0_i32_0 : i32, i32, i32
  }
  func.func @transform_2(%arg0: i32) -> (i32, i32) {
    %c0_i32 = arith.constant 0 : i32
    %c0_i32_0 = arith.constant 0 : i32
    %c0_i32_1 = arith.constant 0 : i32
    return %c0_i32, %c0_i32_0 : i32, i32
  }
  func.func @transform_3(%arg0: i32) -> (i32, i32) {
    %c0_i32 = arith.constant 0 : i32
    %c0_i32_0 = arith.constant 0 : i32
    %c0_i32_1 = arith.constant 0 : i32
    return %c0_i32, %c0_i32_0 : i32, i32
  }
  func.func @transform_4(%arg0: i32) -> (i32, i32) {
    %c0_i32 = arith.constant 0 : i32
    %c0_i32_0 = arith.constant 0 : i32
    %c0_i32_1 = arith.constant 0 : i32
    return %c0_i32, %c0_i32_0 : i32, i32
  }
  func.func @transform_5(%arg0: i32) -> (i32, i32, i32) {
    %c0_i32 = arith.constant 0 : i32
    %c0_i32_0 = arith.constant 0 : i32
    %c0_i32_1 = arith.constant 0 : i32
    return %arg0, %c0_i32, %c0_i32_0 : i32, i32, i32
  }
}

</mosaic_0001>

<bundles_post_ra>
// kernel: self_attn_layer.1
= control target key start
LH: loop header
LB: loop body
LE: loop exit
PB: predicated region body
PF: predicated region fallthrough
CT: control target
= control target key end

     0   :  { %vm38_vm0 = vcmask 261120   ;;  %s1868_s28 = smov 64   ;;  %s2171_s0 = inlined_call_operand.vmem [shape: f32[1,16,32], index: 0, kind: input, shape index: {}]   ;;  %s2172_s1 = inlined_call_operand.vmem [shape: f32[1,16,32], index: 1, kind: input, shape index: {}]   ;;  %s2173_s2 = inlined_call_operand.vmem [shape: f32[32,192], index: 2, kind: input, shape index: {}]   ;;  %s2174_s3 = inlined_call_operand.vmem [shape: f32[64,32], index: 3, kind: input, shape index: {}]   ;;  %s2175_s4 = inlined_call_operand.vmem [shape: f32[8,128], index: 4, kind: input, shape index: {}]   ;;  %s2176_s5 = inlined_call_operand.hbm [shape: f32[1,16,32], index: 5, kind: output, shape index: {}]  }
   0x1   :  { %v1916_v0 = vld [vmem:[%s2173_s2 + $0x30] sm:$0xff]  ;;  %v1921_v1 = vld [vmem:[%s2173_s2 + $0x20] sm:$0xff]  ;;  %v1944_v6 = vld [vmem:[%s2171_s0 + $0x8] sm:$0xff] }
   0x2   :  { %1672 = vmatprep.subr.mxu1 %v1916_v0  ;;  %v1927_v2 = vld [vmem:[%s2173_s2 + $0x10] sm:$0xff]  ;;  %v1932_v3 = vld [vmem:[%s2171_s0] sm:$0xff]  ;;  %130 = vrot.lane.b32.xlu0 %v1916_v0, %s1868_s28  ;;  %v27_v7 = vld [vmem:[%s2172_s1 + $0x8] sm:$0xff] }
   0x3   :  { %v26_v4 = vld [vmem:[%s2172_s1] sm:$0xff]  ;;  %1673 = vmatpush3.msra.mxu1 %v1916_v0  ;;  %126 = vrot.lane.b32.xlu1 %v1927_v2, %s1868_s28 }
   0x4   :  { %v28_v5 = vadd.f32 %v26_v4, %v1932_v3 }
   0x5   :  { %10 = vsyncpa [#allocation3], 0  ;;  %1674 = vmatprep.subr.mxu1 %v1921_v1  ;;  %v1956_v8 = vld [vmem:[%s2173_s2] sm:$0xff]  ;;  %v29_v9 = vadd.f32 %v27_v7, %v1944_v6  ;;  %vm227_vm1 = vcmask 64512   ;;  %s1869_s10 = smov 88   ;;  %s1870_s11 = smov 96   ;;  %v584_v33 = vlaneseq }
   0x6   :  { %1675 = vmatpush3.msra.mxu1 %v1921_v1  ;;  %1680 = vmatprep.mubr.msk.f32.mxu1 %vm38_vm0, %v28_v5  ;;  %v1976_v14 = vld [vmem:[%s2175_s4] ss:$0 sm:$0xff]  ;;  %s1871_s12 = smov 120   ;;  %s1872_s13 = smov 80   ;;  %v1876_v45 = vmov -1e+30  }
   0x7   :  { %1676 = vmatprep.subr.mxu1 %v1927_v2  ;;  %128 = vrot.lane.b32.xlu0 %v1921_v1, %s1868_s28  ;;  %s1873_s14 = smov 112   ;;  %s1874_s15 = smov 72   ;;  %v585_v34 = vshrl.u32 %v584_v33, 7  ;;  %v690_v36 = vand.u32 127, %v584_v33  ;;  %vm727_vm5 = vcmask 130048   ;;  %vm1188_vm11 = vcmask 195584  }
   0x8   :  { %1677 = vmatpush3.msra.mxu1 %v1927_v2  ;;  %124 = vrot.lane.b32.xlu1 %v1956_v8, %s1868_s28  ;;  %s1875_s16 = smov 104   ;;  %s1877_s17 = smov 32   ;;  %vm1431_vm12 = vcmask 523264  }
   0x9   :  { %1678 = vmatprep.subr.mxu1 %v1956_v8  ;;  %v586_v35 = vadd.s32 8, %v585_v34  ;;  %v588_v37 = vadd.s32 24, %v585_v34  ;;  %v695_v39 = vand.u32 1, %v690_v36  ;;  %v597_v41 = vand.u32 1, %v585_v34  ;;  %s1878_s18 = smov 8   ;;  %s1879_s19 = smov 16  }
   0xa   :  { %1679 = vmatpush3.msra.mxu1 %v1956_v8  ;;  %v587_v42 = vadd.s32 16, %v585_v34  ;;  %v589_v44 = vadd.s32 32, %v585_v34  ;;  %v590_v48 = vadd.s32 40, %v585_v34  ;;  %v591_v51 = vadd.s32 48, %v585_v34  ;;  %s1880_s20 = smov 24  }
   0xb   :  { %1681 = vmatmul.mubr.msk.f32.vlgmr.msra.gmra.mxu1 %vm38_vm0, %v29_v9  ;;  %v604_v38 = vand.u32 1, %v586_v35  ;;  %v618_v40 = vand.u32 1, %v588_v37  ;;  %vm703_vm4 = vcmp.eq.s32.totalorder %v597_v41, %v695_v39  ;;  %v592_v60 = vadd.s32 56, %v585_v34 }
   0xc   :  { %1691 = vmatprep.mubr.msk.f32.mxu1 %vm38_vm0, %v1932_v3  ;;  %v611_v47 = vand.u32 1, %v587_v42  ;;  %v711_v55 = vsel %vm703_vm4, 0.0, %v1876_v45  ;;  %v625_v56 = vand.u32 1, %v589_v44  ;;  %v632_v59 = vand.u32 1, %v590_v48 }
   0xd   :  { %vm704_vm2 = vcmp.eq.s32.totalorder %v604_v38, %v695_v39  ;;  %vm706_vm3 = vcmp.eq.s32.totalorder %v618_v40, %v695_v39  ;;  %v639_v62 = vand.u32 1, %v591_v51  ;;  %v646_v9 = vand.u32 1, %v592_v60 }
   0xe   :  { %v712_v46 = vsel %vm704_vm2, 0.0, %v1876_v45  ;;  %v714_v50 = vsel %vm706_vm3, 0.0, %v1876_v45  ;;  %vm705_vm6 = vcmp.eq.s32.totalorder %v611_v47, %v695_v39  ;;  %vm707_vm7 = vcmp.eq.s32.totalorder %v625_v56, %v695_v39 }
   0xf   :  { %v713_v7 = vsel %vm705_vm6, 0.0, %v1876_v45  ;;  %vm708_vm8 = vcmp.eq.s32.totalorder %v632_v59, %v695_v39  ;;  %vm709_vm9 = vcmp.eq.s32.totalorder %v639_v62, %v695_v39  ;;  %vm710_vm10 = vcmp.eq.s32.totalorder %v646_v9, %v695_v39 }
  0x74   :  { %v131_v10 = vpop.permute.xlu0 %130 }
  0x75   :  { %1683 = vmatprep.subr.mxu1 %v131_v10  ;;  %v127_v11 = vpop.permute.xlu1 %126 }
  0x76   :  { %1684 = vmatpush3.msra.mxu1 %v131_v10 }
  0x79   :  { %v129_v12 = vpop.permute.xlu0 %128 }
  0x7a   :  { %1685 = vmatprep.subr.mxu1 %v129_v12  ;;  %v125_v13 = vpop.permute.xlu1 %124 }
  0x7b   :  { %1686 = vmatpush3.msra.mxu1 %v129_v12 }
  0x7c   :  { %1687 = vmatprep.subr.mxu1 %v127_v11 }
  0x7d   :  { %1688 = vmatpush3.msra.mxu1 %v127_v11 }
  0x7e   :  { %1689 = vmatprep.subr.mxu1 %v125_v13 }
  0x7f   :  { %1690 = vmatpush3.msra.mxu1 %v125_v13  ;;  %v715_v13 = vsel %vm707_vm7, 0.0, %v1876_v45 }
  0x80   :  { %1692 = vmatmul.mubr.msk.f32.vlgmr.msra.gmra.mxu1 %vm38_vm0, %v1944_v6 }
  0xcb   :  { %v1682_v15 = vpop.f32.mrf.mxu1 }
  0xcc   :  { %v117_v16 = vadd.f32 %v1682_v15, %v1976_v14  ;;  %v716_v15 = vsel %vm708_vm8, 0.0, %v1876_v45 }
  0xcd   :  { %v111_v17 = vpop.f32.mrf.mxu1 }
  0xce   :  { %v112_v18 = vadd.f32 %v1976_v14, %v111_v17  ;;  %317 = vrot.lane.b32.xlu1 %v117_v16, %s1869_s10  ;;  %225 = vrot.lane.b32.xlu0 %v117_v16, %s1870_s11 }
  0xd0   :  { %1698 = vmatprep.mubr.msk.f32.mxu0 %vm227_vm1, %v112_v18 }
  0xd2   :  { %313 = vrot.lane.b32.xlu1 %v117_v16, %s1871_s12  ;;  %408 = vrot.lane.b32.xlu0 %v117_v16, %s1872_s13 }
  0xd6   :  { %404 = vrot.lane.b32.xlu1 %v117_v16, %s1873_s14  ;;  %499 = vrot.lane.b32.xlu0 %v117_v16, %s1874_s15 }
  0xda   :  { %315 = vrot.lane.b32.xlu1 %v112_v18, %s1869_s10  ;;  %223 = vrot.lane.b32.xlu0 %v112_v18, %s1870_s11 }
  0xde   :  { %311 = vrot.lane.b32.xlu1 %v112_v18, %s1871_s12  ;;  %406 = vrot.lane.b32.xlu0 %v112_v18, %s1872_s13 }
  0xe2   :  { %497 = vrot.lane.b32.xlu1 %v112_v18, %s1874_s15  ;;  %402 = vrot.lane.b32.xlu0 %v112_v18, %s1873_s14 }
  0xe6   :  { %495 = vrot.lane.b32.xlu1 %v117_v16, %s1875_s16  ;;  %493 = vrot.lane.b32.xlu0 %v112_v18, %s1875_s16  ;;  %v717_v18 = vsel %vm709_vm9, 0.0, %v1876_v45 }
 0x140   :  { %v318_v19 = vpop.permute.xlu1 %317  ;;  %v226_v20 = vpop.permute.xlu0 %225 }
 0x141   :  { %1694 = vmatprep.subr.msk.mxu0 %vm227_vm1, %v226_v20  ;;  %1701 = vmatprep.subr.msk.mxu1 %vm227_vm1, %v318_v19  ;;  %v2012_v43 = vpop.f32.mrf.mxu1 }
 0x142   :  { %1695 = vmatpush3.xpose.msk.msra.mxu0 %vm227_vm1, %v226_v20  ;;  %1702 = vmatpush3.xpose.msk.msra.mxu1 %vm227_vm1, %v318_v19 }
 0x143   :  { %v212_v49 = vpop.f32.mrf.mxu1 }
 0x144   :  { %v314_v21 = vpop.permute.xlu1 %313  ;;  %v409_v22 = vpop.permute.xlu0 %408 }
 0x148   :  { %v405_v23 = vpop.permute.xlu1 %404  ;;  %v500_v24 = vpop.permute.xlu0 %499 }
 0x14c   :  { %v316_v25 = vpop.permute.xlu1 %315  ;;  %v224_v26 = vpop.permute.xlu0 %223 }
 0x14d   :  { %1696 = vmatprep.subr.msk.mxu0 %vm227_vm1, %v224_v26  ;;  %1703 = vmatprep.subr.msk.mxu1 %vm227_vm1, %v316_v25 }
 0x14e   :  { %1697 = vmatpush3.xpose.msk.msra.mxu0 %vm227_vm1, %v224_v26  ;;  %1704 = vmatpush3.xpose.msk.msra.mxu1 %vm227_vm1, %v316_v25 }
 0x14f   :  { %1708 = vmatprep.subr.msk.mxu0 %vm227_vm1, %v409_v22  ;;  %1715 = vmatprep.subr.msk.mxu1 %vm227_vm1, %v500_v24 }
 0x150   :  { %v312_v27 = vpop.permute.xlu1 %311  ;;  %v407_v28 = vpop.permute.xlu0 %406 }
 0x151   :  { %1699 = vmatmul.mubr.msk.f32.vlgmr.msra.gmra.mxu0 %vm227_vm1, %v117_v16  ;;  %1705 = vmatprep.mubr.msk.f32.mxu1 %vm227_vm1, %v312_v27 }
 0x152   :  { %1706 = vmatmul.mubr.msk.f32.vlgmr.msra.gmra.mxu1 %vm227_vm1, %v314_v21  ;;  %1709 = vmatpush3.xpose.msk.msra.mxu0 %vm227_vm1, %v409_v22 }
 0x153   :  { %1716 = vmatpush3.xpose.msk.msra.mxu1 %vm227_vm1, %v500_v24  ;;  %1710 = vmatprep.subr.msk.mxu0 %vm227_vm1, %v407_v28 }
 0x154   :  { %v498_v29 = vpop.permute.xlu1 %497  ;;  %v403_v30 = vpop.permute.xlu0 %402 }
 0x155   :  { %1712 = vmatprep.mubr.msk.f32.mxu0 %vm227_vm1, %v403_v30  ;;  %1717 = vmatprep.subr.msk.mxu1 %vm227_vm1, %v498_v29 }
 0x156   :  { %1711 = vmatpush3.xpose.msk.msra.mxu0 %vm227_vm1, %v407_v28 }
 0x157   :  { %1718 = vmatpush3.xpose.msk.msra.mxu1 %vm227_vm1, %v498_v29 }
 0x158   :  { %v496_v31 = vpop.permute.xlu1 %495  ;;  %v494_v32 = vpop.permute.xlu0 %493 }
 0x159   :  { %1713 = vmatmul.mubr.msk.f32.vlgmr.msra.gmra.mxu0 %vm227_vm1, %v405_v23  ;;  %1719 = vmatprep.mubr.msk.f32.mxu1 %vm227_vm1, %v494_v32  ;;  %v718_v23 = vsel %vm710_vm10, 0.0, %v1876_v45 }
 0x15a   :  { %1720 = vmatmul.mubr.msk.f32.vlgmr.msra.gmra.mxu1 %vm227_vm1, %v496_v31 }
 0x211   :  { %v1700_v52 = vpop.f32.mrf.mxu0 }
 0x212   :  { %v2014_v53 = vadd.f32 %v1700_v52, %v712_v46  ;;  %v1707_v54 = vpop.f32.mrf.mxu1 }
 0x213   :  { %v2016_v57 = vadd.f32 %v1707_v54, %v714_v50  ;;  %v302_v58 = vpop.f32.mrf.mxu0 }
 0x214   :  { %v731_v61 = vsel %vm727_vm5, %v2014_v53, -inf  ;;  %v2020_v63 = vadd.f32 %v711_v55, %v302_v58  ;;  %v393_v5 = vpop.f32.mrf.mxu1 }
 0x215   :  { %732 = vmax.xlane.f32.xlu1 %v731_v61  ;;  %v737_v4 = vsel %vm727_vm5, %v2016_v57, -inf  ;;  %v721_v10 = vadd.f32 %v713_v7, %v393_v5 }
 0x216   :  { %738 = vmax.xlane.f32.xlu0 %v737_v4  ;;  %v728_v12 = vsel %vm727_vm5, %v2020_v63, -inf }
 0x217   :  { %v734_v22 = vsel %vm727_vm5, %v721_v10, -inf }
 0x219   :  { %v1714_v11 = vpop.f32.mrf.mxu0 }
 0x21a   :  { %v1721_v16 = vpop.f32.mrf.mxu1  ;;  %729 = vmax.xlane.f32.xlu0 %v728_v12  ;;  %v724_v21 = vadd.f32 %v1714_v11, %v716_v15 }
 0x21b   :  { %v484_v17 = vpop.f32.mrf.mxu0  ;;  %v726_v26 = vadd.f32 %v1721_v16, %v718_v23 }
 0x21c   :  { %v723_v19 = vadd.f32 %v715_v13, %v484_v17  ;;  %v575_v20 = vpop.f32.mrf.mxu1  ;;  %v743_v27 = vsel %vm727_vm5, %v724_v21, -inf }
 0x21d   :  { %v2027_v24 = vadd.f32 %v717_v18, %v575_v20  ;;  %v749_v29 = vsel %vm727_vm5, %v726_v26, -inf }
 0x21e   :  { %735 = vmax.xlane.f32.xlu0 %v734_v22  ;;  %v740_v25 = vsel %vm727_vm5, %v723_v19, -inf }
 0x21f   :  { %741 = vmax.xlane.f32.xlu1 %v740_v25  ;;  %v746_v28 = vsel %vm727_vm5, %v2027_v24, -inf }
 0x222   :  { %744 = vmax.xlane.f32.xlu0 %v743_v27 }
 0x223   :  { %747 = vmax.xlane.f32.xlu1 %v746_v28 }
 0x226   :  { %750 = vmax.xlane.f32.xlu0 %v749_v29 }
 0x234   :  { %137 = vrot.lane.b32.xlu1 %v1976_v14, %s1868_s28 }
 0x29e   :  { %v733_v30 = vpop.xlane.xlu1 %732 }
 0x29f   :  { %v739_v38 = vpop.xlane.xlu0 %738  ;;  %v753_v42 = vsub.f32 %v2014_v53, %v733_v30 }
 0x2a0   :  { %v755_v44 = vsub.f32 %v2016_v57, %v739_v38 }
 0x2a2   :  { %v766_v46 = vmul.f32 1.442695, %v755_v44 }
 0x2a3   :  { %v730_v41 = vpop.xlane.xlu0 %729 }
 0x2a4   :  { %v752_v47 = vsub.f32 %v2020_v63, %v730_v41 }
 0x2a7   :  { %v736_v45 = vpop.xlane.xlu0 %735 }
 0x2a8   :  { %v742_v31 = vpop.xlane.xlu1 %741  ;;  %v754_v50 = vsub.f32 %v721_v10, %v736_v45 }
 0x2a9   :  { %v756_v32 = vsub.f32 %v723_v19, %v742_v31 }
 0x2aa   :  { %v764_v51 = vmul.f32 1.442695, %v754_v50 }
 0x2ab   :  { %v768_v33 = vmul.f32 1.442695, %v756_v32  ;;  %v745_v48 = vpop.xlane.xlu0 %744 }
 0x2ac   :  { %v748_v34 = vpop.xlane.xlu1 %747  ;;  %v757_v52 = vsub.f32 %v724_v21, %v745_v48 }
 0x2ad   :  { %1806 = vpow2.f32 %v768_v33  ;;  %v758_v11 = vsub.f32 %v2027_v24, %v748_v34 }
 0x2ae   :  { %v770_v53 = vmul.f32 1.442695, %v757_v52 }
 0x2af   :  { %v751_v54 = vpop.xlane.xlu0 %750  ;;  %v772_v12 = vmul.f32 1.442695, %v758_v11 }
 0x2b0   :  { %v138_v35 = vpop.permute.xlu1 %137  ;;  %v759_v55 = vsub.f32 %v726_v26, %v751_v54 }
 0x2b1   :  { %v218_v36 = vadd.f32 %v2012_v43, %v138_v35  ;;  %v2037_v37 = vadd.f32 %v212_v49, %v138_v35  ;;  %v762_v43 = vmul.f32 1.442695, %v753_v42  ;;  %v760_v49 = vmul.f32 1.442695, %v752_v47 }
 0x2b2   :  { %v774_v57 = vmul.f32 1.442695, %v759_v55 }
 0x2b3   :  { %901 = vrot.lane.b32.xlu0 %v218_v36, %s1871_s12  ;;  %1722 = vmatprep.subr.mxu0 %v218_v36  ;;  %1808 = vpow2.f32 %v762_v43 }
 0x2b4   :  { %1723 = vmatpush3.msra.mxu0 %v218_v36  ;;  %1810 = vpow2.f32 %v766_v46 }
 0x2b5   :  { %1724 = vmatprep.subr.mxu0 %v2037_v37  ;;  %1812 = vpow2.f32 %v760_v49 }
 0x2b6   :  { %1725 = vmatpush3.msra.mxu0 %v2037_v37  ;;  %1814 = vpow2.f32 %v764_v51 }
 0x2b7   :  { %899 = vrot.lane.b32.xlu0 %v2037_v37, %s1871_s12  ;;  %1816 = vpow2.f32 %v770_v53 }
 0x2b8   :  { %1818 = vpow2.f32 %v774_v57 }
 0x2b9   :  { %1820 = vpow2.f32 %v772_v12 }
 0x2ba   :  { %v2044_v39 = vpop.eup %1806 }
 0x2bb   :  { %v788_v40 = vsel %vm727_vm5, %v2044_v39, 0.0 }
 0x2bc   :  { %789 = vadd.xlane.f32.xlu1 %v788_v40 }
 0x2c0   :  { %v1809_v56 = vpop.eup %1808 }
 0x2c1   :  { %v779_v58 = vsel %vm727_vm5, %v1809_v56, 0.0  ;;  %v2053_v59 = vpop.eup %1810 }
 0x2c2   :  { %v785_v60 = vsel %vm727_vm5, %v2053_v59, 0.0  ;;  %v1813_v61 = vpop.eup %1812 }
 0x2c3   :  { %v776_v62 = vsel %vm727_vm5, %v1813_v61, 0.0  ;;  %v1815_v63 = vpop.eup %1814 }
 0x2c4   :  { %v782_v4 = vsel %vm727_vm5, %v1815_v63, 0.0  ;;  %v1817_v5 = vpop.eup %1816 }
 0x2c5   :  { %v791_v7 = vsel %vm727_vm5, %v1817_v5, 0.0  ;;  %v2060_v9 = vpop.eup %1818 }
 0x2c6   :  { %v797_v10 = vsel %vm727_vm5, %v2060_v9, 0.0  ;;  %v1821_v13 = vpop.eup %1820 }
 0x2c7   :  { %v794_v15 = vsel %vm727_vm5, %v1821_v13, 0.0 }
 0x2cd   :  { %988 = vrot.lane.b32.xlu1 %v218_v36, %s1873_s14 }
 0x2d1   :  { %1195 = vrot.lane.b32.xlu1 %v1921_v1, %s1877_s17 }
 0x2d5   :  { %1193 = vrot.lane.b32.xlu1 %v1927_v2, %s1877_s17 }
 0x2d6   :  { %780 = vadd.xlane.f32.xlu0 %v779_v58 }
 0x2da   :  { %786 = vadd.xlane.f32.xlu0 %v785_v60 }
 0x2de   :  { %777 = vadd.xlane.f32.xlu0 %v776_v62 }
 0x2e2   :  { %783 = vadd.xlane.f32.xlu0 %v782_v4 }
 0x2e6   :  { %792 = vadd.xlane.f32.xlu0 %v791_v7 }
 0x2ea   :  { %798 = vadd.xlane.f32.xlu0 %v797_v10 }
 0x300   :  { %1075 = vrot.lane.b32.xlu0 %v218_v36, %s1875_s16 }
 0x304   :  { %986 = vrot.lane.b32.xlu0 %v2037_v37, %s1873_s14 }
 0x323   :  { %795 = vadd.xlane.f32.xlu0 %v794_v15 }
 0x325   :  { %v902_v16 = vpop.permute.xlu0 %901 }
 0x326   :  { %1729 = vmatprep.subr.mxu1 %v902_v16 }
 0x327   :  { %1730 = vmatpush3.msra.mxu1 %v902_v16 }
 0x329   :  { %v900_v17 = vpop.permute.xlu0 %899 }
 0x32a   :  { %1731 = vmatprep.subr.mxu1 %v900_v17 }
 0x32b   :  { %1732 = vmatpush3.msra.mxu1 %v900_v17 }
 0x339   :  { %1073 = vrot.lane.b32.xlu0 %v2037_v37, %s1875_s16 }
 0x33d   :  { %1197 = vrot.lane.b32.xlu0 %v1916_v0, %s1877_s17 }
 0x345   :  { %v790_v18 = vpop.xlane.xlu1 %789 }
 0x346   :  { %1822 = vrcp.f32 %v790_v18 }
 0x349   :  { %v989_v19 = vpop.permute.xlu1 %988 }
 0x34a   :  { %1736 = vmatprep.subr.mxu0 %v989_v19 }
 0x34d   :  { %v1196_v47 = vpop.permute.xlu1 %1195 }
 0x351   :  { %v1194_v0 = vpop.permute.xlu1 %1193 }
 0x353   :  { %v1823_v25 = vpop.eup %1822 }
 0x354   :  { %v812_v33 = vmul.f32 %v1823_v25, %v2044_v39 }
 0x35f   :  { %v781_v20 = vpop.xlane.xlu0 %780 }
 0x360   :  { %1824 = vrcp.f32 %v781_v20 }
 0x363   :  { %v787_v21 = vpop.xlane.xlu0 %786 }
 0x367   :  { %v778_v22 = vpop.xlane.xlu0 %777 }
 0x368   :  { %1826 = vrcp.f32 %v778_v22 }
 0x369   :  { %1828 = vrcp.f32 %v787_v21 }
 0x36b   :  { %v784_v23 = vpop.xlane.xlu0 %783 }
 0x36c   :  { %1830 = vrcp.f32 %v784_v23 }
 0x36d   :  { %v1825_v27 = vpop.eup %1824 }
 0x36e   :  { %v809_v31 = vmul.f32 %v1825_v27, %v1809_v56  ;;  %v2115_v27 = vld [vmem:[%s2175_s4 + $0x1] ss:$0 sm:$0xff] }
 0x36f   :  { %v793_v24 = vpop.xlane.xlu0 %792 }
 0x370   :  { %1832 = vrcp.f32 %v793_v24 }
 0x373   :  { %v799_v26 = vpop.xlane.xlu0 %798 }
 0x374   :  { %1834 = vrcp.f32 %v799_v26  ;;  %v1330_v26 = vld [vmem:[%s2173_s2 + $0x28] sm:$0xff] }
 0x375   :  { %v1827_v28 = vpop.eup %1826 }
 0x376   :  { %v808_v29 = vmul.f32 %v1827_v28, %v1813_v61  ;;  %v1829_v32 = vpop.eup %1828  ;;  %v1329_v28 = vld [vmem:[%s2173_s2 + $0x18] sm:$0xff] }
 0x377   :  { %v1076_v30 = vpop.permute.xlu0 %1075  ;;  %v811_v37 = vmul.f32 %v1829_v32, %v2053_v59  ;;  %v1424_v32 = vld [vmem:[%s2174_s3 + $0x28] sm:$0xff] }
 0x378   :  { %1726 = vmatprep.mubr.msk.f32.mxu0 %vm727_vm5, %v808_v29  ;;  %1743 = vmatprep.subr.mxu1 %v1076_v30  ;;  %v1328_v29 = vld [vmem:[%s2173_s2 + $0x8] sm:$0xff] }
 0x379   :  { %v1831_v34 = vpop.eup %1830  ;;  %1727 = vmatmul.mubr.msk.f32.vlgmr.msra.gmra.mxu0 %vm727_vm5, %v809_v31  ;;  %v1425_v31 = vld [vmem:[%s2174_s3 + $0x30] sm:$0xff] }
 0x37a   :  { %1737 = vmatpush3.msra.mxu0 %v989_v19  ;;  %1740 = vmatprep.mubr.msk.f32.mxu0 %vm727_vm5, %v812_v33  ;;  %v810_v35 = vmul.f32 %v1831_v34, %v1815_v63  ;;  %v1423_v33 = vld [vmem:[%s2174_s3 + $0x20] sm:$0xff] }
 0x37b   :  { %v987_v36 = vpop.permute.xlu0 %986 }
 0x37c   :  { %1733 = vmatprep.mubr.msk.f32.mxu1 %vm727_vm5, %v810_v35  ;;  %1738 = vmatprep.subr.mxu0 %v987_v36 }
 0x37d   :  { %v1833_v38 = vpop.eup %1832  ;;  %1734 = vmatmul.mubr.msk.f32.vlgmr.msra.gmra.mxu1 %vm727_vm5, %v811_v37  ;;  %1739 = vmatpush3.msra.mxu0 %v987_v36 }
 0x37e   :  { %1744 = vmatpush3.msra.mxu1 %v1076_v30  ;;  %v813_v40 = vmul.f32 %v1833_v38, %v1817_v5  ;;  %v1426_v30 = vld [vmem:[%s2174_s3 + $0x38] sm:$0xff] }
 0x380   :  { %1741 = vmatmul.mubr.msk.f32.vlgmr.msra.gmra.mxu0 %vm727_vm5, %v813_v40 }
 0x381   :  { %v1835_v42 = vpop.eup %1834 }
 0x382   :  { %v815_v45 = vmul.f32 %v1835_v42, %v2060_v9 }
 0x3ac   :  { %v796_v39 = vpop.xlane.xlu0 %795 }
 0x3ad   :  { %1836 = vrcp.f32 %v796_v39 }
 0x3b0   :  { %v1074_v41 = vpop.permute.xlu0 %1073 }
 0x3b1   :  { %1745 = vmatprep.subr.mxu1 %v1074_v41 }
 0x3b2   :  { %1746 = vmatpush3.msra.mxu1 %v1074_v41 }
 0x3b4   :  { %v1198_v46 = vpop.permute.xlu0 %1197 }
 0x3b5   :  { %1750 = vmatprep.subr.mxu0 %v1198_v46 }
 0x3b6   :  { %1751 = vmatpush3.msra.mxu0 %v1198_v46 }
 0x3b7   :  { %1752 = vmatprep.subr.mxu0 %v1196_v47 }
 0x3b8   :  { %1753 = vmatpush3.msra.mxu0 %v1196_v47 }
 0x3b9   :  { %1754 = vmatprep.subr.mxu0 %v1194_v0 }
 0x3ba   :  { %v1837_v43 = vpop.eup %1836  ;;  %1755 = vmatpush3.msra.mxu0 %v1194_v0 }
 0x3bb   :  { %v814_v44 = vmul.f32 %v1837_v43, %v1821_v13 }
 0x3bd   :  { %1747 = vmatprep.mubr.msk.f32.mxu1 %vm727_vm5, %v814_v44 }
 0x3be   :  { %1748 = vmatmul.mubr.msk.f32.vlgmr.msra.gmra.mxu1 %vm727_vm5, %v815_v45 }
 0x439   :  { %v1728_v1 = vpop.f32.mrf.mxu0 }
 0x43b   :  { %v888_v49 = vpop.f32.mrf.mxu0 }
 0x43d   :  { %v1735_v48 = vpop.f32.mrf.mxu1 }
 0x43e   :  { %1164 = vrot.lane.b32.xlu0 %v1735_v48, %s1878_s18  ;;  %v1422_v48 = vld [vmem:[%s2174_s3 + $0x18] sm:$0xff] }
 0x43f   :  { %v977_v51 = vpop.f32.mrf.mxu1 }
 0x440   :  { %v1742_v50 = vpop.f32.mrf.mxu0 }
 0x442   :  { %1162 = vrot.lane.b32.xlu0 %v977_v51, %s1878_s18  ;;  %v1064_v2 = vpop.f32.mrf.mxu0  ;;  %v1419_v51 = vld [vmem:[%s2174_s3] sm:$0xff] }
 0x443   :  { %1170 = vrot.lane.b32.xlu1 %v1064_v2, %s1879_s19 }
 0x446   :  { %1172 = vrot.lane.b32.xlu0 %v1742_v50, %s1879_s19  ;;  %v1420_v50 = vld [vmem:[%s2174_s3 + $0x8] sm:$0xff] }
 0x44a   :  { %1191 = vrot.lane.b32.xlu0 %v1956_v8, %s1877_s17 }
 0x44e   :  { %1203 = vrot.lane.b32.xlu0 %v1976_v14, %s1877_s17 }
 0x47e   :  { %v1749_v52 = vpop.f32.mrf.mxu1 }
 0x480   :  { %v1151_v54 = vpop.f32.mrf.mxu1 }
 0x481   :  { %1178 = vrot.lane.b32.xlu1 %v1151_v54, %s1880_s20 }
 0x485   :  { %1180 = vrot.lane.b32.xlu1 %v1749_v52, %s1880_s20 }
 0x4b0   :  { %v1165_v53 = vpop.permute.xlu0 %1164 }
 0x4b1   :  { %v1185_v14 = vsel %vm227_vm1, %v1728_v1, %v1165_v53  ;;  %v1601_v1 = vld [vmem:[%s2175_s4 + $0x2] ss:$0 sm:$0xff] }
 0x4b4   :  { %v1163_v55 = vpop.permute.xlu0 %1162 }
 0x4b5   :  { %v1171_v58 = vpop.permute.xlu1 %1170  ;;  %v1184_v59 = vsel %vm227_vm1, %v888_v49, %v1163_v55  ;;  %v1421_v49 = vld [vmem:[%s2174_s3 + $0x10] sm:$0xff]  ;;  %s1881_s3 = smov [#allocation2]  }
 0x4b6   :  { %v1186_v8 = vsel %vm727_vm5, %v1184_v59, %v1171_v58 }
 0x4b8   :  { %v1173_v56 = vpop.permute.xlu0 %1172 }
 0x4b9   :  { %v1187_v62 = vsel %vm727_vm5, %v1185_v14, %v1173_v56 }
 0x4bc   :  { %v1192_v57 = vpop.permute.xlu0 %1191 }
 0x4bd   :  { %1756 = vmatprep.subr.mxu0 %v1192_v57 }
 0x4be   :  { %1757 = vmatpush3.msra.mxu0 %v1192_v57 }
 0x4bf   :  { %1772 = vmatprep.subr.mxu0 %v1426_v30 }
 0x4c0   :  { %v1204_v5 = vpop.permute.xlu0 %1203 }
 0x4f3   :  { %v1179_v60 = vpop.permute.xlu1 %1178 }
 0x4f4   :  { %v1189_v61 = vsel %vm1188_vm11, %v1186_v8, %v1179_v60 }
 0x4f5   :  { %1758 = vmatprep.mubr.msk.f32.mxu0 %vm38_vm0, %v1189_v61 }
 0x4f7   :  { %v1181_v63 = vpop.permute.xlu1 %1180 }
 0x4f8   :  { %v1190_v4 = vsel %vm1188_vm11, %v1187_v62, %v1181_v63 }
 0x4f9   :  { %1759 = vmatmul.mubr.msk.f32.vlgmr.msra.gmra.mxu0 %vm38_vm0, %v1190_v4 }
 0x4fa   :  { %1773 = vmatpush3.msra.mxu0 %v1426_v30 }
 0x4fb   :  { %1774 = vmatprep.subr.mxu0 %v1425_v31 }
 0x4fc   :  { %1775 = vmatpush3.msra.mxu0 %v1425_v31 }
 0x4fd   :  { %1776 = vmatprep.subr.mxu0 %v1424_v32 }
 0x4fe   :  { %1777 = vmatpush3.msra.mxu0 %v1424_v32 }
 0x4ff   :  { %1778 = vmatprep.subr.mxu0 %v1423_v33 }
 0x500   :  { %1779 = vmatpush3.msra.mxu0 %v1423_v33 }
 0x501   :  { %1780 = vmatprep.subr.mxu0 %v1422_v48 }
 0x502   :  { %1781 = vmatpush3.msra.mxu0 %v1422_v48 }
 0x503   :  { %1782 = vmatprep.subr.mxu0 %v1421_v49 }
 0x504   :  { %1783 = vmatpush3.msra.mxu0 %v1421_v49 }
 0x505   :  { %1784 = vmatprep.subr.mxu0 %v1420_v50 }
 0x506   :  { %1785 = vmatpush3.msra.mxu0 %v1420_v50 }
 0x507   :  { %1786 = vmatprep.subr.mxu0 %v1419_v51 }
 0x508   :  { %1787 = vmatpush3.msra.mxu0 %v1419_v51 }
 0x5b9   :  { %v1760_v7 = vpop.f32.mrf.mxu0 }
 0x5ba   :  { %v1284_v9 = vadd.f32 %v1760_v7, %v1204_v5 }
 0x5bb   :  { %v1278_v10 = vpop.f32.mrf.mxu0 }
 0x5bc   :  { %v1279_v11 = vadd.f32 %v1278_v10, %v1204_v5  ;;  %v1288_v12 = vadd.f32 %v1284_v9, %v1944_v6 }
 0x5be   :  { %v1292_v13 = vsel %vm38_vm0, %v1288_v12, 0.0  ;;  %v1287_v15 = vadd.f32 %v1279_v11, %v1932_v3  ;;  %v1331_v3 = vld [vmem:[%s2173_s2 + $0x38] sm:$0xff] }
 0x5bf   :  { %1293 = vadd.xlane.f32.xlu0 %v1292_v13  ;;  %1761 = vmatprep.subr.mxu1 %v1331_v3 }
 0x5c0   :  { %v1289_v16 = vsel %vm38_vm0, %v1287_v15, 0.0  ;;  %1762 = vmatpush3.msra.mxu1 %v1331_v3 }
 0x5c1   :  { %1290 = vadd.xlane.f32.xlu1 %v1289_v16  ;;  %1763 = vmatprep.subr.mxu1 %v1330_v26 }
 0x5c2   :  { %1764 = vmatpush3.msra.mxu1 %v1330_v26 }
 0x5c3   :  { %1765 = vmatprep.subr.mxu1 %v1329_v28 }
 0x5c4   :  { %1766 = vmatpush3.msra.mxu1 %v1329_v28 }
 0x5c5   :  { %1767 = vmatprep.subr.mxu1 %v1328_v29 }
 0x5c6   :  { %1768 = vmatpush3.msra.mxu1 %v1328_v29 }
 0x648   :  { %v1294_v17 = vpop.xlane.xlu0 %1293 }
 0x649   :  { %v1297_v18 = vmul.f32 0.03125, %v1294_v17 }
 0x64a   :  { %v1291_v19 = vpop.xlane.xlu1 %1290 }
 0x64b   :  { %v1299_v20 = vsub.f32 %v1288_v12, %v1297_v18  ;;  %v1296_v21 = vmul.f32 0.03125, %v1291_v19 }
 0x64d   :  { %v1298_v22 = vsub.f32 %v1287_v15, %v1296_v21  ;;  %v1301_v23 = vmul.f32 %v1299_v20, %v1299_v20 }
 0x64f   :  { %v1305_v24 = vsel %vm38_vm0, %v1301_v23, 0.0  ;;  %v1300_v25 = vmul.f32 %v1298_v22, %v1298_v22 }
 0x650   :  { %1306 = vadd.xlane.f32.xlu1 %v1305_v24 }
 0x651   :  { %v1302_v6 = vsel %vm38_vm0, %v1300_v25, 0.0 }
 0x652   :  { %1303 = vadd.xlane.f32.xlu0 %v1302_v6 }
 0x661   :  { %1428 = vrot.lane.b32.xlu1 %v1601_v1, %s1868_s28 }
 0x668   :  { %1323 = vrot.lane.b32.xlu0 %v2115_v27, %s1870_s11 }
 0x6d9   :  { %v1307_v34 = vpop.xlane.xlu1 %1306 }
 0x6da   :  { %v1309_v35 = vmul.f32 0.03125, %v1307_v34 }
 0x6db   :  { %v1304_v36 = vpop.xlane.xlu0 %1303 }
 0x6dc   :  { %v1311_v37 = vadd.f32 1e-05, %v1309_v35  ;;  %v1308_v38 = vmul.f32 0.03125, %v1304_v36 }
 0x6dd   :  { %v1429_v57 = vpop.permute.xlu1 %1428 }
 0x6de   :  { %1838 = vrsqrt.f32 %v1311_v37  ;;  %v1310_v40 = vadd.f32 1e-05, %v1308_v38 }
 0x6df   :  { %v1324_v46 = vpop.permute.xlu0 %1323 }
 0x6e0   :  { %1840 = vrsqrt.f32 %v1310_v40 }
 0x6eb   :  { %v1839_v39 = vpop.eup %1838 }
 0x6ec   :  { %v1315_v41 = vmul.f32 %v1839_v39, %v1299_v20 }
 0x6ed   :  { %v1841_v42 = vpop.eup %1840 }
 0x6ee   :  { %v1314_v43 = vmul.f32 %v1841_v42, %v1298_v22  ;;  %v1321_v44 = vmul.f32 %v2115_v27, %v1315_v41 }
 0x6f0   :  { %v1320_v45 = vmul.f32 %v2115_v27, %v1314_v43  ;;  %v1327_v0 = vadd.f32 %v1324_v46, %v1321_v44 }
 0x6f2   :  { %v1326_v47 = vadd.f32 %v1324_v46, %v1320_v45 }
 0x6f4   :  { %1769 = vmatprep.mubr.msk.f32.mxu1 %vm38_vm0, %v1326_v47 }
 0x6f5   :  { %1770 = vmatmul.mubr.msk.f32.vlgmr.msra.gmra.mxu1 %vm38_vm0, %v1327_v0 }
 0x7b5   :  { %v1771_v2 = vpop.f32.mrf.mxu1 }
 0x7b6   :  { %v1414_v52 = vadd.f32 %v1771_v2, %v1601_v1 }
 0x7b7   :  { %v1408_v54 = vpop.f32.mrf.mxu1 }
 0x7b8   :  { %v1409_v53 = vadd.f32 %v1601_v1, %v1408_v54  ;;  %v1418_v56 = vmax.f32 %v1414_v52, 0.0 }
 0x7ba   :  { %v1417_v55 = vmax.f32 %v1409_v53, 0.0 }
 0x7bc   :  { %1788 = vmatprep.mubr.msk.f32.mxu0 %vm1431_vm12, %v1417_v55 }
 0x7bd   :  { %1789 = vmatmul.mubr.msk.f32.vlgmr.msra.gmra.mxu0 %vm1431_vm12, %v1418_v56 }
 0x87d   :  { %v1790_v58 = vpop.f32.mrf.mxu0 }
 0x87e   :  { %v1510_v59 = vadd.f32 %v1790_v58, %v1429_v57 }
 0x87f   :  { %v1504_v8 = vpop.f32.mrf.mxu0 }
 0x880   :  { %v1505_v60 = vadd.f32 %v1504_v8, %v1429_v57  ;;  %v1514_v61 = vadd.f32 %v1510_v59, %v1327_v0 }
 0x882   :  { %v1518_v14 = vsel %vm38_vm0, %v1514_v61, 0.0  ;;  %v1513_v62 = vadd.f32 %v1505_v60, %v1326_v47 }
 0x883   :  { %1519 = vadd.xlane.f32.xlu0 %v1518_v14 }
 0x884   :  { %v1515_v63 = vsel %vm38_vm0, %v1513_v62, 0.0 }
 0x885   :  { %1516 = vadd.xlane.f32.xlu1 %v1515_v63 }
 0x90c   :  { %v1520_v4 = vpop.xlane.xlu0 %1519 }
 0x90d   :  { %v1522_v5 = vmul.f32 0.03125, %v1520_v4 }
 0x90e   :  { %v1517_v7 = vpop.xlane.xlu1 %1516 }
 0x90f   :  { %v1524_v9 = vsub.f32 %v1514_v61, %v1522_v5  ;;  %v1521_v10 = vmul.f32 0.03125, %v1517_v7 }
 0x911   :  { %v1523_v11 = vsub.f32 %v1513_v62, %v1521_v10  ;;  %v1526_v12 = vmul.f32 %v1524_v9, %v1524_v9 }
 0x913   :  { %v1530_v13 = vsel %vm38_vm0, %v1526_v12, 0.0  ;;  %v1525_v15 = vmul.f32 %v1523_v11, %v1523_v11 }
 0x914   :  { %1531 = vadd.xlane.f32.xlu1 %v1530_v13 }
 0x915   :  { %v1527_v16 = vsel %vm38_vm0, %v1525_v15, 0.0 }
 0x916   :  { %1528 = vadd.xlane.f32.xlu0 %v1527_v16 }
 0x925   :  { %1546 = vrot.lane.b32.xlu1 %v2115_v27, %s1877_s17  ;;  %s1558_s17 = sshll.u32 %s1881_s3, 4  ;;  %s1559_s17 = int_to_ptr.vmem [resolvable:$true] %s1558_s17 }
 0x926   :  { %p1851_p1 = scmp.lt.s32.totalorder %s1559_s17, %s1559_s17 }
 0x92c   :  { %1541 = vrot.lane.b32.xlu0 %v2115_v27, %s1868_s28  ;;  %s1846_s28 = scalar_lea.vmem %s1559_s17, 256 }
 0x92d   :  { %p1847_p0 = scmp.ne.s32.totalorder %s1559_s17, %s1846_s28  ;;  %p1852_p2 = scmp.lt.s32.totalorder %s1846_s28, %s1846_s28 }
 0x92f   :  { %p1853_p3 = por %p1852_p2, %p1851_p1 }
 0x931   :  { %p1854_p4 = pnand %p1853_p3, %p1847_p0 }
 0x99d   :  { %v1532_v17 = vpop.xlane.xlu1 %1531 }
 0x99e   :  { %v1534_v18 = vmul.f32 0.03125, %v1532_v17 }
 0x99f   :  { %v1529_v19 = vpop.xlane.xlu0 %1528 }
 0x9a0   :  { %v1536_v20 = vadd.f32 1e-05, %v1534_v18  ;;  %v1533_v21 = vmul.f32 0.03125, %v1529_v19 }
 0x9a1   :  { %v1547_v3 = vpop.permute.xlu1 %1546 }
 0x9a2   :  { %1842 = vrsqrt.f32 %v1536_v20  ;;  %v1535_v22 = vadd.f32 1e-05, %v1533_v21 }
 0x9a3   :  { %v1542_v24 = vpop.permute.xlu0 %1541 }
 0x9a4   :  { %1844 = vrsqrt.f32 %v1535_v22 }
 0x9af   :  { %v1843_v23 = vpop.eup %1842 }
 0x9b0   :  { %v1540_v25 = vmul.f32 %v1843_v23, %v1524_v9 }
 0x9b1   :  { %v1845_v6 = vpop.eup %1844 }
 0x9b2   :  { %v1539_v26 = vmul.f32 %v1845_v6, %v1523_v11  ;;  %v1545_v28 = vmul.f32 %v1542_v24, %v1540_v25 }
 0x9b4   :  { %v1544_v29 = vmul.f32 %v1542_v24, %v1539_v26  ;;  %v1550_v30 = vadd.f32 %v1547_v3, %v1545_v28 }
 0x9b6   :  { %v1549_v27 = vadd.f32 %v1547_v3, %v1544_v29  ;;  %1552 = vst.msk [vmem:[#allocation2 + $0x8] sm:$0xff] %vm38_vm0, %v1550_v30 }
 0x9b8   :  { %1551 = vst.msk [vmem:[#allocation2] sm:$0xff] %vm38_vm0, %v1549_v27 }
 0x9b9   :  { %1857 = shalt.err (!%p1854_p4)
}
 0x9ba   :  { %s1882_s23 = smov 128  }
 0x9bb   :  { %1564 = dma.vmem_to_hbm [thread:$0]  %s1559_s17, 256, %s2176_s5, [#allocation3], %s1882_s23, %s1882_s23, %s1878_s18  }
 0x9bc   :  { %1866 = dma.done.wait [#allocation3], 256  }
 0x9bd   :  { %1867 = vsyncadd [#allocation3], 4294967040 }
 0x9be   :  { %1568 = vsyncpa [#allocation3], 1 }

</bundles_post_ra>
